<compile_context>
chip_gen: v7x
topology: tpu7x:2x2x1
jax: 0.10.0
libtpu: 0.0.40
codegen_flags: <defaults>
</compile_context>

<pallas_src>
import jax
import jax.numpy as jnp
from jax.experimental import pallas as pl
from jax.experimental.pallas import tpu as pltpu

ITERATIONS = 3
EPS = 1e-6
LANES = 128


def motif_kernel(params_ref, x_ref, y_ref, traj_ref, o_ref):
    # params_ref: SMEM f32[3*ITERATIONS] = [gamma | 1+tau*wx | 1+tau*wc]
    # x_ref/o_ref: (1, 1, rows, 128) ; y_ref/traj_ref: (1, C, rows, 128)
    # Sublane-dense layout: last two dims (rows, 128) fill every vreg.
    y = y_ref[...].astype(jnp.float32)
    traj = traj_ref[...].astype(jnp.float32)

    # csm_module.kernel_estimate: trajectory-modulated, coil-RSS-normalized.
    # rsqrt runs on the EUP slot (free w.r.t. the VPU) + one multiply.
    yt = y * traj
    inv = jax.lax.rsqrt(jnp.sum(yt * yt, axis=1, keepdims=True) + EPS)
    csm = yt * inv                                  # (1, C, rows, 128)

    x = x_ref[...].astype(jnp.float32)              # (1, 1, rows, 128)

    # Hoisted scalar reads (loop is statically unrolled, so these are read
    # once, not re-materialized per iteration).
    gam = [params_ref[t] for t in range(ITERATIONS)]
    a_x = [params_ref[ITERATIONS + t] for t in range(ITERATIONS)]
    a_c = [params_ref[2 * ITERATIONS + t] for t in range(ITERATIONS)]

    # TODO(synk): the reference param_update_gd_step multiplies by the *full*
    # gamma/tau vectors (a broadcasting bug unless last dim == iterations);
    # the per-iteration scalar gamma[t]/tau[t] (the clear intent) is used here.
    # TODO(synk): mvf is None throughout the reference forward; that branch is
    # omitted (its dc/reg terms never influence the returned x).
    for t in range(ITERATIONS):                     # static unroll (small count)
        resid = csm * x - y                         # (1, C, rows, 128)
        gr = gam[t] * resid                         # gamma folded in once
        gx_dc = jnp.sum(csm * gr, axis=1, keepdims=True)   # gamma * x_dc
        gcsm_dc = x * gr                            # gamma * csm_dc (old x)
        # regularization folded into the scalar coefficient:
        #   x - g*x_dc + tau*(wx*x) == (1 + tau*wx)*x - g*x_dc
        x = a_x[t] * x - gx_dc
        csm = a_c[t] * csm - gcsm_dc

    o_ref[...] = x.astype(o_ref.dtype)


def _pick_row_tile(n_rows, batch):
    # 8-16 sublane rows x 128 lanes per block: dense vregs, low register
    # pressure, and enough grid steps (>=8 counting the batch axis) to
    # load-balance v7x's two TensorCores and keep DMA/compute overlapped.
    # The second-minor block dim must be a multiple of 8 or the full extent.
    for rb in (16, 8):
        if n_rows >= rb and batch * pl.cdiv(n_rows, rb) >= 8:
            return rb
    if n_rows > 8 and n_rows % 8 == 0:
        return 8
    return n_rows   # small problem: a single full-extent row block


def motif_unrolling(x, kspace_data_csm, kspace_traj_csm, gamma, tau, wx, wc):
    """x: (B, 1, *spatial); kspace_*: (B, C, *spatial). Returns x's shape/dtype.

    kspace_data_csm / kspace_traj_csm may be stored in bfloat16 (halves the
    dominant HBM streams on memory-bound v5e/v6e); arithmetic is f32 inside.
    """
    B = x.shape[0]
    C = kspace_data_csm.shape[1]
    S = 1
    for d in x.shape[2:]:
        S *= d

    R = pl.cdiv(S, LANES)          # sublane rows after the (rows, 128) re-layout
    Sp = R * LANES

    xf = x.reshape(B, 1, S)
    yf = kspace_data_csm.reshape(B, C, S)
    tf_ = kspace_traj_csm.reshape(B, C, S)
    if Sp != S:
        # TODO(synk): this pad re-materializes y/traj in HBM; it is only hit
        # when the flattened spatial size is not a multiple of 128 (typical
        # MRI grids are).  Zero padding is numerically benign (padded x stays
        # exactly 0 through all iterations).
        pad = ((0, 0), (0, 0), (0, Sp - S))
        xf, yf, tf_ = (jnp.pad(a, pad) for a in (xf, yf, tf_))
    # Sublane-dense re-layout: spatial -> (rows, 128) so every vreg is full.
    xf = xf.reshape(B, 1, R, LANES)
    yf = yf.reshape(B, C, R, LANES)
    tf_ = tf_.reshape(B, C, R, LANES)

    rb = _pick_row_tile(R, B)
    grid = (B, pl.cdiv(R, rb))     # ragged last row-block handled by Pallas

    # Fold the scalar regularizers into per-iteration update coefficients and
    # collapse all scalars into one small SMEM-resident params array.
    gamma = gamma.astype(jnp.float32)
    tau = tau.astype(jnp.float32)
    a_x = 1.0 + tau * wx.astype(jnp.float32)[0]
    a_c = 1.0 + tau * wc.astype(jnp.float32)[0]
    params = jnp.concatenate([gamma, a_x, a_c])    # (3*ITERATIONS,) f32

    bytes_accessed = int(
        xf.size * xf.dtype.itemsize
        + yf.size * yf.dtype.itemsize
        + tf_.size * tf_.dtype.itemsize
        + xf.size * x.dtype.itemsize
        + params.size * 4)
    flops = int(B * C * Sp * (4 + 8 * ITERATIONS) + B * Sp * (1 + 4 * ITERATIONS))

    # TODO(synk): if xprof shows exposed DMA at these block sizes, add
    # `pipeline_mode=pl.Buffered(3)` to the y/traj BlockSpecs below.
    out = pl.pallas_call(
        motif_kernel,
        out_shape=jax.ShapeDtypeStruct((B, 1, R, LANES), x.dtype),
        grid=grid,
        in_specs=[
            pl.BlockSpec(memory_space=pltpu.MemorySpace.SMEM),           # params
            pl.BlockSpec((1, 1, rb, LANES), lambda b, i: (b, 0, i, 0)),  # x
            pl.BlockSpec((1, C, rb, LANES), lambda b, i: (b, 0, i, 0)),  # kspace data
            pl.BlockSpec((1, C, rb, LANES), lambda b, i: (b, 0, i, 0)),  # kspace traj
        ],
        out_specs=pl.BlockSpec((1, 1, rb, LANES), lambda b, i: (b, 0, i, 0)),
        input_output_aliases={1: 0},   # reuse x's HBM buffer for the output
        compiler_params=pltpu.CompilerParams(
            dimension_semantics=("parallel", "parallel")),
        cost_estimate=pl.CostEstimate(
            flops=flops, transcendentals=int(B * Sp),
            bytes_accessed=bytes_accessed),
    )(params, xf, yf, tf_)

    out = out.reshape(B, 1, Sp)
    if Sp != S:
        out = out[:, :, :S]
    return out.reshape(x.shape)


def motif_reference(x, kspace_data_csm, kspace_traj_csm, gamma, tau, wx, wc):
    """Pure-JAX reference using the module's original update formula."""
    B = x.shape[0]
    C = kspace_data_csm.shape[1]
    xf = x.reshape(B, 1, -1).astype(jnp.float32)
    yf = kspace_data_csm.reshape(B, C, -1).astype(jnp.float32)
    tf_ = kspace_traj_csm.reshape(B, C, -1).astype(jnp.float32)

    yt = yf * tf_
    inv = jax.lax.rsqrt(jnp.sum(yt * yt, axis=1, keepdims=True) + EPS)
    csm = yt * inv
    xx = xf
    for t in range(ITERATIONS):
        resid = csm * xx - yf
        x_dc = jnp.sum(csm * resid, axis=1, keepdims=True)
        csm_dc = xx * resid
        x_reg = wx[0] * xx
        csm_reg = wc[0] * csm
        xx = xx - gamma[t] * x_dc + tau[t] * x_reg
        csm = csm - gamma[t] * csm_dc + tau[t] * csm_reg
    return xx.reshape(x.shape).astype(x.dtype)


if __name__ == "__main__":
    # Deterministic parameter init (nn.Parameter(ones * init)).  Modest step
    # sizes keep the synthetic unrolled GD well-conditioned for random inputs.
    gamma_init, tau_init = 0.5, 0.2
    gamma = jnp.ones((ITERATIONS,), jnp.float32) * gamma_init
    tau = jnp.ones((ITERATIONS,), jnp.float32) * tau_init
    wx = jnp.array([0.10], jnp.float32)   # denoise_module scalar weight
    wc = jnp.array([0.05], jnp.float32)   # csm_module regularizer weight

    def run_case(B, C, H, W, kspace_dtype, tol):
        key = jax.random.PRNGKey(0)
        k1, k2, k3 = jax.random.split(key, 3)
        x = jax.random.normal(k1, (B, 1, H, W), jnp.float32)
        y = jax.random.normal(k2, (B, C, H, W), jnp.float32).astype(kspace_dtype)
        traj = jax.random.normal(k3, (B, C, H, W), jnp.float32).astype(kspace_dtype)

        out = jax.block_until_ready(
            motif_unrolling(x, y, traj, gamma, tau, wx, wc))
        ref = motif_reference(x, y.astype(jnp.float32), traj.astype(jnp.float32),
                              gamma, tau, wx, wc)
        assert out.shape == x.shape
        assert jnp.allclose(out, ref, rtol=tol, atol=tol), (
            f"mismatch vs reference B={B} C={C} H={H} W={W} {kspace_dtype}")

    # Single full-extent row block (rows == full extent), f32 k-space storage.
    run_case(2, 4, 16, 16, jnp.float32, 1e-3)
    # Tiled path: grid = (B=2, 4 row blocks of 8x128), f32 k-space storage.
    run_case(2, 4, 64, 64, jnp.float32, 1e-3)
    # bf16 HBM storage for the dominant k-space / trajectory streams.
    run_case(2, 4, 64, 64, jnp.bfloat16, 2e-3)

    print("KERNEL_OK")
</pallas_src>

<mosaic_0001>
module attributes {stable_mosaic.version = 11 : i64} {
  func.func @motif_kernel(%arg0: i32, %arg1: i32, %arg2: memref<9xf32, #tpu.memory_space<smem>>, %arg3: memref<1x1x2x128xf32, #tpu.memory_space<vmem>>, %arg4: memref<1x4x2x128xf32, #tpu.memory_space<vmem>>, %arg5: memref<1x4x2x128xf32, #tpu.memory_space<vmem>>, %arg6: memref<1x1x2x128xf32, #tpu.memory_space<vmem>>) attributes {dimension_semantics = [#tpu.dimension_semantics<parallel>, #tpu.dimension_semantics<parallel>], iteration_bounds = array<i64: 2, 1>, scalar_prefetch = 0 : i64, scratch_operands = 0 : i64, tpu.core_type = #tpu.core_type<tc>, window_params = [{transform_indices = @transform_0, window_bounds = array<i64: 9>}, {transform_indices = @transform_1, window_bounds = array<i64: 1, 1, 2, 128>}, {transform_indices = @transform_2, window_bounds = array<i64: 1, 4, 2, 128>}, {transform_indices = @transform_3, window_bounds = array<i64: 1, 4, 2, 128>}, {transform_indices = @transform_4, window_bounds = array<i64: 1, 1, 2, 128>}]} {
    %c0 = arith.constant 0 : index
    %c0_0 = arith.constant 0 : index
    %c0_1 = arith.constant 0 : index
    %c0_2 = arith.constant 0 : index
    %0 = vector.load %arg4[%c0, %c0_0, %c0_1, %c0_2] : memref<1x4x2x128xf32, #tpu.memory_space<vmem>>, vector<1x4x2x128xf32>
    %c0_3 = arith.constant 0 : index
    %c0_4 = arith.constant 0 : index
    %c0_5 = arith.constant 0 : index
    %c0_6 = arith.constant 0 : index
    %1 = vector.load %arg5[%c0_3, %c0_4, %c0_5, %c0_6] : memref<1x4x2x128xf32, #tpu.memory_space<vmem>>, vector<1x4x2x128xf32>
    %2 = arith.mulf %0, %1 : vector<1x4x2x128xf32>
    %3 = arith.mulf %2, %2 : vector<1x4x2x128xf32>
    %cst = arith.constant dense<0.000000e+00> : vector<1x2x128xf32>
    %4 = vector.multi_reduction <add>, %3, %cst [1] : vector<1x4x2x128xf32> to vector<1x2x128xf32>
    %5 = vector.shape_cast %4 : vector<1x2x128xf32> to vector<1x1x2x128xf32>
    %cst_7 = arith.constant 9.99999997E-7 : f32
    %6 = vector.broadcast %cst_7 : f32 to vector<1x1x2x128xf32>
    %7 = arith.addf %5, %6 : vector<1x1x2x128xf32>
    %8 = math.rsqrt %7 : vector<1x1x2x128xf32>
    %9 = vector.broadcast %8 : vector<1x1x2x128xf32> to vector<1x4x2x128xf32>
    %10 = arith.mulf %2, %9 : vector<1x4x2x128xf32>
    %c0_8 = arith.constant 0 : index
    %c0_9 = arith.constant 0 : index
    %c0_10 = arith.constant 0 : index
    %c0_11 = arith.constant 0 : index
    %11 = vector.load %arg3[%c0_8, %c0_9, %c0_10, %c0_11] : memref<1x1x2x128xf32, #tpu.memory_space<vmem>>, vector<1x1x2x128xf32>
    %c0_12 = arith.constant 0 : index
    %12 = memref.load %arg2[%c0_12] : memref<9xf32, #tpu.memory_space<smem>>
    %c1 = arith.constant 1 : index
    %13 = memref.load %arg2[%c1] : memref<9xf32, #tpu.memory_space<smem>>
    %c2 = arith.constant 2 : index
    %14 = memref.load %arg2[%c2] : memref<9xf32, #tpu.memory_space<smem>>
    %c3 = arith.constant 3 : index
    %15 = memref.load %arg2[%c3] : memref<9xf32, #tpu.memory_space<smem>>
    %c4 = arith.constant 4 : index
    %16 = memref.load %arg2[%c4] : memref<9xf32, #tpu.memory_space<smem>>
    %c5 = arith.constant 5 : index
    %17 = memref.load %arg2[%c5] : memref<9xf32, #tpu.memory_space<smem>>
    %c6 = arith.constant 6 : index
    %18 = memref.load %arg2[%c6] : memref<9xf32, #tpu.memory_space<smem>>
    %c7 = arith.constant 7 : index
    %19 = memref.load %arg2[%c7] : memref<9xf32, #tpu.memory_space<smem>>
    %20 = vector.broadcast %11 : vector<1x1x2x128xf32> to vector<1x4x2x128xf32>
    %21 = arith.mulf %10, %20 : vector<1x4x2x128xf32>
    %22 = arith.subf %21, %0 : vector<1x4x2x128xf32>
    %23 = vector.broadcast %12 : f32 to vector<1x4x2x128xf32>
    %24 = arith.mulf %23, %22 : vector<1x4x2x128xf32>
    %25 = arith.mulf %10, %24 : vector<1x4x2x128xf32>
    %cst_13 = arith.constant dense<0.000000e+00> : vector<1x2x128xf32>
    %26 = vector.multi_reduction <add>, %25, %cst_13 [1] : vector<1x4x2x128xf32> to vector<1x2x128xf32>
    %27 = vector.shape_cast %26 : vector<1x2x128xf32> to vector<1x1x2x128xf32>
    %28 = vector.broadcast %11 : vector<1x1x2x128xf32> to vector<1x4x2x128xf32>
    %29 = arith.mulf %28, %24 : vector<1x4x2x128xf32>
    %30 = vector.broadcast %15 : f32 to vector<1x1x2x128xf32>
    %31 = arith.mulf %30, %11 : vector<1x1x2x128xf32>
    %32 = arith.subf %31, %27 : vector<1x1x2x128xf32>
    %33 = vector.broadcast %18 : f32 to vector<1x4x2x128xf32>
    %34 = arith.mulf %33, %10 : vector<1x4x2x128xf32>
    %35 = arith.subf %34, %29 : vector<1x4x2x128xf32>
    %36 = vector.broadcast %32 : vector<1x1x2x128xf32> to vector<1x4x2x128xf32>
    %37 = arith.mulf %35, %36 : vector<1x4x2x128xf32>
    %38 = arith.subf %37, %0 : vector<1x4x2x128xf32>
    %39 = vector.broadcast %13 : f32 to vector<1x4x2x128xf32>
    %40 = arith.mulf %39, %38 : vector<1x4x2x128xf32>
    %41 = arith.mulf %35, %40 : vector<1x4x2x128xf32>
    %cst_14 = arith.constant dense<0.000000e+00> : vector<1x2x128xf32>
    %42 = vector.multi_reduction <add>, %41, %cst_14 [1] : vector<1x4x2x128xf32> to vector<1x2x128xf32>
    %43 = vector.shape_cast %42 : vector<1x2x128xf32> to vector<1x1x2x128xf32>
    %44 = vector.broadcast %32 : vector<1x1x2x128xf32> to vector<1x4x2x128xf32>
    %45 = arith.mulf %44, %40 : vector<1x4x2x128xf32>
    %46 = vector.broadcast %16 : f32 to vector<1x1x2x128xf32>
    %47 = arith.mulf %46, %32 : vector<1x1x2x128xf32>
    %48 = arith.subf %47, %43 : vector<1x1x2x128xf32>
    %49 = vector.broadcast %19 : f32 to vector<1x4x2x128xf32>
    %50 = arith.mulf %49, %35 : vector<1x4x2x128xf32>
    %51 = arith.subf %50, %45 : vector<1x4x2x128xf32>
    %52 = vector.broadcast %48 : vector<1x1x2x128xf32> to vector<1x4x2x128xf32>
    %53 = arith.mulf %51, %52 : vector<1x4x2x128xf32>
    %54 = arith.subf %53, %0 : vector<1x4x2x128xf32>
    %55 = vector.broadcast %14 : f32 to vector<1x4x2x128xf32>
    %56 = arith.mulf %55, %54 : vector<1x4x2x128xf32>
    %57 = arith.mulf %51, %56 : vector<1x4x2x128xf32>
    %cst_15 = arith.constant dense<0.000000e+00> : vector<1x2x128xf32>
    %58 = vector.multi_reduction <add>, %57, %cst_15 [1] : vector<1x4x2x128xf32> to vector<1x2x128xf32>
    %59 = vector.shape_cast %58 : vector<1x2x128xf32> to vector<1x1x2x128xf32>
    %60 = vector.broadcast %17 : f32 to vector<1x1x2x128xf32>
    %61 = arith.mulf %60, %48 : vector<1x1x2x128xf32>
    %62 = arith.subf %61, %59 : vector<1x1x2x128xf32>
    %c0_16 = arith.constant 0 : index
    %c0_17 = arith.constant 0 : index
    %c0_18 = arith.constant 0 : index
    %c0_19 = arith.constant 0 : index
    %63 = vector.load %arg6[%c0_16, %c0_17, %c0_18, %c0_19] : memref<1x1x2x128xf32, #tpu.memory_space<vmem>>, vector<1x1x2x128xf32>
    tpu.vector_store %arg6[%c0_16, %c0_17, %c0_18, %c0_19], %62 {strides = array<i32>} : memref<1x1x2x128xf32, #tpu.memory_space<vmem>>, vector<1x1x2x128xf32>,
    return
  }
  func.func @transform_0(%arg0: i32, %arg1: i32) -> i32 {
    %c0_i32 = arith.constant 0 : i32
    %c0_i32_0 = arith.constant 0 : i32
    return %c0_i32 : i32
  }
  func.func @transform_1(%arg0: i32, %arg1: i32) -> (i32, i32, i32, i32) {
    %c0_i32 = arith.constant 0 : i32
    %c0_i32_0 = arith.constant 0 : i32
    %c0_i32_1 = arith.constant 0 : i32
    return %arg0, %c0_i32, %arg1, %c0_i32_0 : i32, i32, i32, i32
  }
  func.func @transform_2(%arg0: i32, %arg1: i32) -> (i32, i32, i32, i32) {
    %c0_i32 = arith.constant 0 : i32
    %c0_i32_0 = arith.constant 0 : i32
    %c0_i32_1 = arith.constant 0 : i32
    return %arg0, %c0_i32, %arg1, %c0_i32_0 : i32, i32, i32, i32
  }
  func.func @transform_3(%arg0: i32, %arg1: i32) -> (i32, i32, i32, i32) {
    %c0_i32 = arith.constant 0 : i32
    %c0_i32_0 = arith.constant 0 : i32
    %c0_i32_1 = arith.constant 0 : i32
    return %arg0, %c0_i32, %arg1, %c0_i32_0 : i32, i32, i32, i32
  }
  func.func @transform_4(%arg0: i32, %arg1: i32) -> (i32, i32, i32, i32) {
    %c0_i32 = arith.constant 0 : i32
    %c0_i32_0 = arith.constant 0 : i32
    %c0_i32_1 = arith.constant 0 : i32
    return %arg0, %c0_i32, %arg1, %c0_i32_0 : i32, i32, i32, i32
  }
}

</mosaic_0001>

<bundles_post_ra>
// kernel: tpu_custom_call.1
= control target key start
LH: loop header
LB: loop body
LE: loop exit
PB: predicated region body
PF: predicated region fallthrough
CT: control target
= control target key end

     0   :  { %s1317_s0 = inlined_call_operand.vmem [shape: f32[9], index: 0, kind: input, shape index: {}]   ;;  %s1318_s1 = inlined_call_operand.hbm [shape: f32[2,1,2,128], index: 1, kind: input, shape index: {}, may-alias: {1,4}]   ;;  %s1319_s2 = inlined_call_operand.hbm [shape: f32[2,4,2,128], index: 2, kind: input, shape index: {}]   ;;  %s1320_s3 = inlined_call_operand.hbm [shape: f32[2,4,2,128], index: 3, kind: input, shape index: {}]   ;;  %s1321_s4 = inlined_call_operand.hbm [shape: f32[2,1,2,128], index: 4, kind: output, shape index: {}, may-alias: {1,4}]  }
   0x1   :  { %1331 = sst [smem:[#allocation18_spill]] %s1317_s0 }
   0x2   :  { %1332 = sst [smem:[#allocation19_spill]] %s1319_s2 }
   0x3   :  { %9 = vsyncpa [#allocation5], 0 }
   0x4   :  { %10 = vsyncpa [#allocation3], 0 }
   0x5   :  { %12 = vsyncpa [#allocation3 + $0x1], 0 }
   0x6   :  { %13 = vsyncpa [#allocation8], 0 }
   0x7   :  { %15 = vsyncpa [#allocation8 + $0x1], 0 }
   0x8   :  { %16 = vsyncpa [#allocation4], 0 }
   0x9   :  { %18 = vsyncpa [#allocation4 + $0x1], 0  ;;  %s976_s15 = smov 0   ;;  %s978_s16 = smov 0  }
   0xa   :  { %s980_s17 = smov 0   ;;  %s982_s18 = smov 0  }
   0xb   :  { %s984_s19 = smov 0   ;;  %s986_s20 = smov 0  }
   0xc LB: > { %1333 = sst [smem:[#allocation15_spill]] %s938_s19  ;;  %s36_s21 = sadd.s32 1, %s938_s19  ;;  %s942_s20 = sphi %s986_s20, %s24_s20   ;;  %s938_s19 = sphi %s984_s19, %s1357_s19   ;;  %s934_s18 = sphi %s982_s18, %s1356_s18   ;;  %s930_s17 = sphi %s980_s17, %s1360_s17   ;;  %s926_s16 = sphi %s978_s16, %s1359_s16   ;;  %s922_s15 = sphi %s976_s15, %s1358_s15  }
   0xd   : > { %s66_s22 = sadd.s32 1, %s930_s17  ;;  %p38_p0 = scmp.ge.s32.totalorder %s36_s21, 2 }
   0xe   : > { %p1322_p1 = scmp.ne.s32.totalorder %s930_s17, %s926_s16  ;;  %p74_p2 = scmp.eq.s32.totalorder %s942_s20, 0 }
   0xf   : > { %s1362_s21 = smov (%p38_p0, %s36_s21), 0  ;;  %p691_p5 = scmp.lt.s32.totalorder %s942_s20, 2 }
  0x10   : > { %1334 = sst [smem:[#allocation16_spill]] %s1362_s21  ;;  %p75_p4 = por %p74_p2, %p1322_p1 }
  0x11   : > { %s61_s23 = ssub.s32 %s938_s19, %s1362_s21  ;;  %s1021_s24 = sand.u32 1, %s930_s17  }
  0x12   : > { %p64_p6 = scmp.eq.s32.totalorder %s61_s23, 0  ;;  %p1023_p7 = pnand %p691_p5, %p75_p4 }
  0x13   : > { %s217_s26 = sand.u32 1, %s942_s20   ;;  %s635_s27 = sshll.u32 %s1021_s24, 3 }
  0x14   : > { %s1030_s28 = scalar_select %p64_p6, %s930_s17, %s66_s22  }
  0x15   : > { %s658_s29 = sshll.u32 %s938_s19, 7  ;;  %s1337_s2 = sld [smem:[#allocation19_spill]] }
  0x16   : > { %1336 = sst [smem:[#allocation17_spill]] %s1030_s28  ;;  %s221_s7 = scalar_lea.vmem [#allocation7], %s635_s27 }
  0x17   : > { %s229_s8 = sshll.u32 %s221_s7, 4  ;;  %s1044_s9 = scalar_lea.sflag [#allocation8], %s217_s26  ;;  %s1042_s8 = int_to_ptr.vmem [resolvable:$true] %s229_s8 }
  0x18   : > { %p1050_p9 = pneg %p1023_p7 }
  0x1b   : > { %s1038_s6 = scalar_lea.hbm %s1337_s2, %s658_s29  ;;  %s752_s14 = scalar_lea.hbm %s1337_s2, 256 }
  0x1c   : > { %s747_s10 = scalar_lea.hbm %s1038_s6, 128  ;;  %p753_p12 = scmp.lt.u32.totalorder %s1038_s6, %s1337_s2 }
  0x1d   : > { %p748_p8 = scmp.ne.s32.totalorder %s1038_s6, %s747_s10  ;;  %p754_p13 = scmp.lt.u32.totalorder %s752_s14, %s747_s10 }
  0x1e   : > { %p756_p2 = scmp.lt.u32.totalorder %s747_s10, %s1038_s6 }
  0x1f   : > { %p750_p10 = pnand %p1050_p9, %p748_p8  ;;  %p755_p0 = por %p754_p13, %p753_p12 }
  0x21   : > { %p751_p11 = pneg %p750_p10  ;;  %p757_p4 = por %p756_p2, %p755_p0 }
  0x23   : > { %p758_p5 = pnand %p757_p4, %p751_p11 }
  0x25   : > { %761 = shalt.err (!%p758_p5)
}
  0x26   : > { %s762_s26 = scalar_lea.vmem %s1042_s8, 128  ;;  %s944_s30 = smov [#allocation7]  }
  0x27   : > { %p763_p6 = scmp.ne.s32.totalorder %s1042_s8, %s762_s26  ;;  %s767_s5 = sshll.u32 %s944_s30, 4  ;;  %s768_s5 = int_to_ptr.vmem [resolvable:$false] %s767_s5 }
  0x28   : > { %s769_s7 = scalar_lea.vmem %s768_s5, 256  ;;  %p770_p3 = scmp.lt.s32.totalorder %s1042_s8, %s768_s5 }
  0x29   : > { %p765_p8 = pnand %p763_p6, %p1050_p9  ;;  %p771_p1 = scmp.lt.s32.totalorder %s769_s7, %s762_s26 }
  0x2b   : > { %p766_p10 = pneg %p765_p8  ;;  %p772_p12 = por %p771_p1, %p770_p3 }
  0x2d   : > { %p773_p13 = pnand %p772_p12, %p766_p10 }
  0x2f   : > { %776 = shalt.err (!%p773_p13)
}
  0x30   : > { %s1323_s10 = smov 32   ;;  %s1324_s12 = smov 2  }
  0x31   : > { %682 = dma.hbm_to_vmem [thread:$0]  (!%p1023_p7), %s1038_s6, 128, %s1042_s8, %s1044_s9, %s1323_s10, %s1323_s10, %s1324_s12  }
  0x32   : > { %s1082_s22 = scalar_lea.hbm %s1320_s3, %s658_s29  ;;  %s243_s23 = scalar_lea.vmem [#allocation9], %s635_s27 }
  0x33   : > { %s251_s26 = sshll.u32 %s243_s23, 4  ;;  %s1087_s30 = sadd.s32 4294967295, %s942_s20   ;;  %s1116_s26 = int_to_ptr.vmem [resolvable:$true] %s251_s26 }
  0x34   : > { %s629_s5 = sadd.s32 4294967294, %s942_s20   ;;  %p79_p1 = scmp.ne.s32.totalorder %s926_s16, %s922_s15 }
  0x35   : > { %p1326_p3 = scmp.eq.s32.totalorder %s1087_s30, 0  ;;  %p161_p11 = scmp.eq.s32.totalorder %s1087_s30, 1 }
  0x36   : > { %p167_p0 = scmp.eq.s32.totalorder %s629_s5, 1  ;;  %p630_p2 = scmp.ge.s32.totalorder %s942_s20, 1 }
  0x37   : > { %p1097_p4 = por %p1326_p3, %p79_p1  ;;  %p1340_p5 = scmp.ne.s32.totalorder %s930_s17, %s926_s16 }
  0x38   : > { %p1108_p8 = por %p167_p0, %p79_p1  ;;  %p174_p10 = scmp.lt.s32.totalorder %s942_s20, 3 }
  0x39   : > { %s1339_s29 = scalar_select %p1097_p4, 1, 0 }
  0x3a   : > { %p1104_p6 = por %p161_p11, %p1340_p5  ;;  %s1343_s0 = sld [smem:[#allocation18_spill]] }
  0x3b   : > { %s1342_s6 = scalar_select %p1108_p8, 1, 0 }
  0x3c   : > { %s1341_s27 = scalar_select %p1104_p6, 1, 0 }
  0x3d   : > { %p1118_p12 = pnand %p630_p2, %p174_p10  ;;  %s633_s23 = sshll.u32 %s1021_s24, 1 }
  0x3e   : > { %s634_s5 = sshll.u32 %s938_s19, 5 }
  0x3f   : > { %s1344_s14 = scalar_select %p1118_p12, 1, 0 }
  0x40   : > { %s187_s13 = sshll.u32 %s1343_s0, 4  ;;  %p672_p13 = pneg %p1118_p12  ;;  %s188_s13 = int_to_ptr.vmem [resolvable:$true] %s187_s13 }
  0x41   : > { %s1135_s7 = scalar_lea.hbm %s1318_s1, %s634_s5  ;;  %s202_s0 = scalar_lea.vmem [#allocation6], %s633_s23 }
  0x42   : > { %p1128_p1 = pnand %p672_p13, %p1326_p3  ;;  %s210_s2 = sshll.u32 %s202_s0, 4  ;;  %s1137_s2 = int_to_ptr.vmem [resolvable:$true] %s210_s2 }
  0x43   : > { %s777_s21 = scalar_lea.vmem %s188_s13, 16  ;;  %p785_p10 = scmp.lt.s32.totalorder %s188_s13, %s188_s13 }
  0x44   : > { %p778_p11 = scmp.ne.s32.totalorder %s188_s13, %s777_s21  ;;  %p779_p0 = pneg %p1128_p1 }
  0x45   : > { %p786_p13 = scmp.lt.s32.totalorder %s777_s21, %s777_s21 }
  0x46   : > { %p780_p2 = pnand %p779_p0, %p778_p11 }
  0x47   : > { %p787_p3 = por %p786_p13, %p785_p10 }
  0x48   : > { %p781_p5 = pneg %p780_p2 }
  0x4a   : > { %p788_p8 = pnand %p787_p3, %p781_p5 }
  0x4c   : > { %791 = shalt.err (!%p788_p8)
}
  0x4d   : > { %s947_s19 = smov [#allocation2]   ;;  %s199_s0 = scalar_lea.sflag [#allocation3], %s1021_s24 }
  0x4e   : > { %675 = dma.vmem_to_smem (!%p1128_p1), %s188_s13, 16, %s947_s19, [#allocation5]  }
  0x4f   : > { %s792_s12 = scalar_lea.hbm %s1135_s7, 32  ;;  %s797_s5 = scalar_lea.hbm %s1318_s1, 64 }
  0x50   : > { %p793_p6 = scmp.ne.s32.totalorder %s1135_s7, %s792_s12  ;;  %p798_p3 = scmp.lt.u32.totalorder %s1135_s7, %s1318_s1 }
  0x51   : > { %p799_p8 = scmp.lt.u32.totalorder %s797_s5, %s792_s12  ;;  %p801_p5 = scmp.lt.u32.totalorder %s792_s12, %s1135_s7 }
  0x52   : > { %p795_p11 = pnand %p793_p6, %p1050_p9 }
  0x53   : > { %p800_p2 = por %p799_p8, %p798_p3 }
  0x54   : > { %p796_p0 = pneg %p795_p11 }
  0x55   : > { %p802_p10 = por %p801_p5, %p800_p2 }
  0x57   : > { %p803_p13 = pnand %p802_p10, %p796_p0 }
  0x59   : > { %806 = shalt.err (!%p803_p13)
}
  0x5a   : > { %s807_s19 = scalar_lea.vmem %s1137_s2, 32  ;;  %s948_s24 = smov [#allocation6]  }
  0x5b   : > { %p808_p6 = scmp.ne.s32.totalorder %s1137_s2, %s807_s19  ;;  %s812_s10 = sshll.u32 %s948_s24, 4  ;;  %s813_s10 = int_to_ptr.vmem [resolvable:$false] %s812_s10 }
  0x5c   : > { %s814_s28 = scalar_lea.vmem %s813_s10, 64  ;;  %p815_p4 = scmp.lt.s32.totalorder %s1137_s2, %s813_s10 }
  0x5d   : > { %p810_p1 = pnand %p808_p6, %p1050_p9  ;;  %p816_p12 = scmp.lt.s32.totalorder %s814_s28, %s807_s19 }
  0x5f   : > { %p811_p11 = pneg %p810_p1  ;;  %p817_p3 = por %p816_p12, %p815_p4 }
  0x61   : > { %p818_p8 = pnand %p817_p3, %p811_p11 }
  0x63   : > { %821 = shalt.err (!%p818_p8)
}
  0x64   : > { %679 = dma.hbm_to_vmem [thread:$0]  (!%p1023_p7), %s1135_s7, 32, %s1137_s2, %s199_s0  }
  0x65   : > { %s822_s13 = scalar_lea.hbm %s1082_s22, 128  ;;  %s827_s23 = scalar_lea.hbm %s1320_s3, 256 }
  0x66   : > { %p823_p0 = scmp.ne.s32.totalorder %s1082_s22, %s822_s13  ;;  %p828_p4 = scmp.lt.u32.totalorder %s1082_s22, %s1320_s3 }
  0x67   : > { %p829_p12 = scmp.lt.u32.totalorder %s827_s23, %s822_s13  ;;  %p831_p13 = scmp.lt.u32.totalorder %s822_s13, %s1082_s22 }
  0x68   : > { %p825_p2 = pnand %p823_p0, %p1050_p9 }
  0x69   : > { %p830_p10 = por %p829_p12, %p828_p4 }
  0x6a   : > { %p826_p5 = pneg %p825_p2 }
  0x6b   : > { %p832_p6 = por %p831_p13, %p830_p10 }
  0x6d   : > { %p833_p1 = pnand %p832_p6, %p826_p5 }
  0x6f   : > { %836 = shalt.err (!%p833_p1)
}
  0x70   : > { %s837_s2 = scalar_lea.vmem %s1116_s26, 128  ;;  %s949_s7 = smov [#allocation9]  }
  0x71   : > { %p838_p11 = scmp.ne.s32.totalorder %s1116_s26, %s837_s2  ;;  %s842_s0 = sshll.u32 %s949_s7, 4  ;;  %s843_s0 = int_to_ptr.vmem [resolvable:$false] %s842_s0 }
  0x72   : > { %s844_s19 = scalar_lea.vmem %s843_s0, 256  ;;  %p845_p0 = scmp.lt.s32.totalorder %s1116_s26, %s843_s0 }
  0x73   : > { %p840_p3 = pnand %p838_p11, %p1050_p9  ;;  %p846_p2 = scmp.lt.s32.totalorder %s844_s19, %s837_s2 }
  0x75   : > { %p841_p8 = pneg %p840_p3  ;;  %p847_p4 = por %p846_p2, %p845_p0 }
  0x77   : > { %p848_p12 = pnand %p847_p4, %p841_p8 }
  0x79   : > { %851 = shalt.err (!%p848_p12)
}
  0x7a   : > { %s1346_s24 = smov 2   ;;  %s1347_s10 = smov 32  }
  0x7b   : > { %685 = dma.hbm_to_vmem [thread:$0]  (!%p1023_p7), %s1082_s22, 128, %s1116_s26, %s1044_s9, %s1347_s10, %s1347_s10, %s1346_s24  }
  0x7c   : > { %p1348_p9 = scmp.ne.s32.totalorder %s1344_s14, 0 }
  0x7d   : > { %p1349_p5 = scmp.eq.s32.totalorder (!%p1348_p9), %s1087_s30, 0 }
  0x7e   : > { %263 = sbr.rel (%p1348_p9) target bundleno = 236 (0xec), region = 36 }
  0x85   : > { %905 = dma.done.wait (%p1349_p5), [#allocation5], 16   ;;  %p1350_p10 = pmov %p1349_p5 }
  0x86   : > { %s1197_s11 = sand.u32 1, %s926_s16   ;;  %p1351_p7 = scmp.ne.s32.totalorder %s1339_s29, 0 }
  0x87   : > { %907 = vsyncadd (%p1350_p10), [#allocation5], 4294967280  ;;  %s643_s25 = sshll.u32 %s1197_s11, 1  ;;  %s270_s28 = scalar_lea.sflag [#allocation3], %s1197_s11 }
  0x88   : > { %s1203_s9 = scalar_lea.vmem [#allocation6], %s643_s25 }
  0x89   : > { %909 = dma.done.wait (%p1351_p7), %s270_s28, 32  }
  0x8a   : > { %911 = vsyncadd (%p1351_p7), %s270_s28, 4294967264  ;;  %s278_s22 = sand.u32 1, %s1087_s30   ;;  %s644_s26 = sshll.u32 %s1197_s11, 3 }
  0x8b   : > { %s279_s14 = scalar_lea.sflag [#allocation8], %s278_s22  ;;  %s282_s13 = scalar_lea.vmem [#allocation7], %s644_s26 }
  0x8c   : > { %913 = dma.done.wait (%p1351_p7), %s279_s14, 256  }
  0x8d   : > { %915 = vsyncadd (%p1351_p7), %s279_s14, 4294967040  ;;  %s291_s12 = scalar_lea.vmem [#allocation9], %s644_s26 }
  0x8e   : > { %296 = sfence }
  0x8f   : > { %v1215_v0 = vld [vmem:[%s282_s13] sm:$0x3]  ;;  %v1217_v1 = vld [vmem:[%s282_s13 + $0x2] sm:$0x3]  ;;  %v1219_v2 = vld [vmem:[%s282_s13 + $0x4] sm:$0x3] }
  0x90   : > { %v1221_v3 = vld [vmem:[%s282_s13 + $0x6] sm:$0x3]  ;;  %v331_v4 = vld [vmem:[%s291_s12] sm:$0x3]  ;;  %v332_v5 = vld [vmem:[%s291_s12 + $0x2] sm:$0x3] }
  0x91   : > { %v333_v6 = vld [vmem:[%s291_s12 + $0x4] sm:$0x3]  ;;  %v334_v7 = vld [vmem:[%s291_s12 + $0x6] sm:$0x3]  ;;  %v335_v8 = vmul.f32 %v331_v4, %v1215_v0  ;;  %v336_v9 = vmul.f32 %v332_v5, %v1217_v1  ;;  %vm343_vm0 = vcmask 1041408   ;;  %s358_s30 = sld [smem:[#allocation2]] }
  0x92   : > { %v337_v10 = vmul.f32 %v333_v6, %v1219_v2  ;;  %v338_v11 = vmul.f32 %v334_v7, %v1221_v3  ;;  %s652_s29 = sld [smem:[#allocation2 + $0x6]]  ;;  %v357_v25 = vld [vmem:[%s1203_s9] sm:$0x3]  ;;  %s1232_s21 = sld [smem:[#allocation2 + $0x3]] }
  0x93   : > { %v339_v12 = vmul.f32 %v335_v8, %v335_v8  ;;  %v340_v13 = vmul.f32 %v336_v9, %v336_v9  ;;  %s647_s23 = sld [smem:[#allocation2 + $0x1]]  ;;  %s653_s5 = sld [smem:[#allocation2 + $0x7]] }
  0x94   : > { %v341_v14 = vmul.f32 %v337_v10, %v337_v10  ;;  %v342_v15 = vmul.f32 %v338_v11, %v338_v11  ;;  %s1243_s8 = sld [smem:[#allocation2 + $0x4]]  ;;  %s648_s2 = sld [smem:[#allocation2 + $0x2]] }
  0x95   : > { %v344_v16 = vsel %vm343_vm0, %v339_v12, 0.0  ;;  %v345_v17 = vsel %vm343_vm0, %v340_v13, 0.0  ;;  %s651_s7 = sld [smem:[#allocation2 + $0x5]]  ;;  %s655_s0 = sshll.u32 %s934_s18, 5 }
  0x96   : > { %v347_v18 = vsel %vm343_vm0, %v341_v14, 0.0  ;;  %v346_v19 = vadd.f32 %v345_v17, %v344_v16  ;;  %v349_v20 = vsel %vm343_vm0, %v342_v15, 0.0  ;;  %s326_s19 = scalar_lea.vmem [#allocation10], %s643_s25  ;;  %s1268_s9 = scalar_lea.hbm %s1321_s4, %s655_s0 }
  0x97   : > { %v374_v34 = vstv %s358_s30  ;;  %s489_s24 = sshll.u32 %s326_s19, 4  ;;  %s475_s22 = scalar_lea.sflag [#allocation4], %s1197_s11  ;;  %s1270_s24 = int_to_ptr.vmem [resolvable:$true] %s489_s24 }
  0x98   : > { %v348_v21 = vadd.f32 %v347_v18, %v346_v19  ;;  %v397_v39 = vstv %s652_s29  ;;  %v394_v44 = vstv %s1232_s21  ;;  %s852_s26 = scalar_lea.vmem %s1270_s24, 32  ;;  %p1352_p6 = scmp.ne.s32.totalorder %s1341_s27, 0 }
  0x99   : > { %v395_v63 = vmul.f32 %v394_v44, %v357_v25  ;;  %v414_v14 = vstv %s647_s23  ;;  %v437_v19 = vstv %s653_s5  ;;  %p853_p13 = scmp.ne.s32.totalorder %s1270_s24, %s852_s26  ;;  %s950_s18 = smov [#allocation10]  }
  0x9a   : > { %v350_v22 = vadd.f32 %v349_v20, %v348_v21  ;;  %s856_s25 = sshll.u32 %s950_s18, 4  ;;  %s857_s25 = int_to_ptr.vmem [resolvable:$false] %s856_s25 }
  0x9b   : > { %p854_p1 = pnand %p853_p13, %p1352_p6  ;;  %s858_s14 = scalar_lea.vmem %s857_s25, 64 }
  0x9c   : > { %v351_v23 = vadd.f32 1e-06, %v350_v22  ;;  %p859_p3 = scmp.lt.s32.totalorder %s1270_s24, %s857_s25  ;;  %p860_p8 = scmp.lt.s32.totalorder %s858_s14, %s852_s26 }
  0x9d   : > { %p855_p11 = pneg %p854_p1 }
  0x9e   : > { %745 = vrsqrt.f32 %v351_v23  ;;  %p861_p0 = por %p860_p8, %p859_p3 }
  0xa0   : > { %p862_p2 = pnand %p861_p0, %p855_p11 }
  0xa8   : > { %v746_v24 = vpop.eup %745 }
  0xa9   : > { %v353_v26 = vmul.f32 %v746_v24, %v335_v8  ;;  %v354_v27 = vmul.f32 %v746_v24, %v336_v9  ;;  %v355_v28 = vmul.f32 %v746_v24, %v337_v10  ;;  %v356_v29 = vmul.f32 %v746_v24, %v338_v11 }
  0xaa   : > { %v434_v24 = vstv %s1243_s8 }
  0xab   : > { %v366_v30 = vmul.f32 %v357_v25, %v353_v26  ;;  %v367_v31 = vmul.f32 %v357_v25, %v354_v27  ;;  %v368_v32 = vmul.f32 %v357_v25, %v355_v28  ;;  %v369_v33 = vmul.f32 %v357_v25, %v356_v29 }
  0xac   : > { %v398_v49 = vmul.f32 %v397_v39, %v353_v26  ;;  %v399_v50 = vmul.f32 %v397_v39, %v354_v27  ;;  %v400_v51 = vmul.f32 %v397_v39, %v355_v28  ;;  %v401_v52 = vmul.f32 %v397_v39, %v356_v29 }
  0xad   : > { %v370_v35 = vsub.f32 %v366_v30, %v1215_v0  ;;  %v371_v36 = vsub.f32 %v367_v31, %v1217_v1  ;;  %v372_v37 = vsub.f32 %v368_v32, %v1219_v2  ;;  %v373_v38 = vsub.f32 %v369_v33, %v1221_v3 }
  0xaf   : > { %v375_v40 = vmul.f32 %v374_v34, %v370_v35  ;;  %v376_v41 = vmul.f32 %v374_v34, %v371_v36  ;;  %v377_v42 = vmul.f32 %v374_v34, %v372_v37  ;;  %v378_v43 = vmul.f32 %v374_v34, %v373_v38 }
  0xb1   : > { %v379_v45 = vmul.f32 %v375_v40, %v353_v26  ;;  %v380_v46 = vmul.f32 %v376_v41, %v354_v27  ;;  %v381_v47 = vmul.f32 %v377_v42, %v355_v28  ;;  %v382_v48 = vmul.f32 %v378_v43, %v356_v29 }
  0xb2   : > { %v390_v56 = vmul.f32 %v375_v40, %v357_v25  ;;  %v391_v58 = vmul.f32 %v376_v41, %v357_v25  ;;  %v392_v59 = vmul.f32 %v377_v42, %v357_v25  ;;  %v393_v60 = vmul.f32 %v378_v43, %v357_v25 }
  0xb3   : > { %v383_v53 = vsel %vm343_vm0, %v379_v45, 0.0  ;;  %v384_v54 = vsel %vm343_vm0, %v380_v46, 0.0  ;;  %v386_v55 = vsel %vm343_vm0, %v381_v47, 0.0  ;;  %v388_v61 = vsel %vm343_vm0, %v382_v48, 0.0 }
  0xb4   : > { %v385_v57 = vadd.f32 %v384_v54, %v383_v53  ;;  %v402_v4 = vsub.f32 %v398_v49, %v390_v56  ;;  %v403_v6 = vsub.f32 %v399_v50, %v391_v58  ;;  %v404_v7 = vsub.f32 %v400_v51, %v392_v59 }
  0xb5   : > { %v405_v8 = vsub.f32 %v401_v52, %v393_v60  ;;  %v454_v54 = vstv %s648_s2 }
  0xb6   : > { %v387_v62 = vadd.f32 %v386_v55, %v385_v57  ;;  %v438_v29 = vmul.f32 %v437_v19, %v402_v4  ;;  %v439_v30 = vmul.f32 %v437_v19, %v403_v6  ;;  %v440_v31 = vmul.f32 %v437_v19, %v404_v7 }
  0xb7   : > { %v441_v32 = vmul.f32 %v437_v19, %v405_v8 }
  0xb8   : > { %v389_v5 = vadd.f32 %v388_v61, %v387_v62 }
  0xba   : > { %v396_v9 = vsub.f32 %v395_v63, %v389_v5 }
  0xbc   : > { %v406_v10 = vmul.f32 %v402_v4, %v396_v9  ;;  %v407_v11 = vmul.f32 %v403_v6, %v396_v9  ;;  %v408_v12 = vmul.f32 %v404_v7, %v396_v9  ;;  %v409_v13 = vmul.f32 %v405_v8, %v396_v9 }
  0xbd   : > { %v435_v43 = vmul.f32 %v434_v24, %v396_v9 }
  0xbe   : > { %v410_v15 = vsub.f32 %v406_v10, %v1215_v0  ;;  %v411_v16 = vsub.f32 %v407_v11, %v1217_v1  ;;  %v412_v17 = vsub.f32 %v408_v12, %v1219_v2  ;;  %v413_v18 = vsub.f32 %v409_v13, %v1221_v3 }
  0xc0   : > { %v415_v20 = vmul.f32 %v414_v14, %v410_v15  ;;  %v416_v21 = vmul.f32 %v414_v14, %v411_v16  ;;  %v417_v22 = vmul.f32 %v414_v14, %v412_v17  ;;  %v418_v23 = vmul.f32 %v414_v14, %v413_v18 }
  0xc2   : > { %v419_v25 = vmul.f32 %v415_v20, %v402_v4  ;;  %v420_v26 = vmul.f32 %v416_v21, %v403_v6  ;;  %v421_v27 = vmul.f32 %v417_v22, %v404_v7  ;;  %v422_v28 = vmul.f32 %v418_v23, %v405_v8 }
  0xc3   : > { %v430_v36 = vmul.f32 %v415_v20, %v396_v9  ;;  %v431_v38 = vmul.f32 %v416_v21, %v396_v9  ;;  %v432_v39 = vmul.f32 %v417_v22, %v396_v9  ;;  %v433_v40 = vmul.f32 %v418_v23, %v396_v9 }
  0xc4   : > { %v423_v33 = vsel %vm343_vm0, %v419_v25, 0.0  ;;  %v424_v34 = vsel %vm343_vm0, %v420_v26, 0.0  ;;  %v426_v35 = vsel %vm343_vm0, %v421_v27, 0.0  ;;  %v428_v41 = vsel %vm343_vm0, %v422_v28, 0.0 }
  0xc5   : > { %v425_v37 = vadd.f32 %v424_v34, %v423_v33  ;;  %v442_v44 = vsub.f32 %v438_v29, %v430_v36  ;;  %v443_v46 = vsub.f32 %v439_v30, %v431_v38  ;;  %v444_v47 = vsub.f32 %v440_v31, %v432_v39 }
  0xc6   : > { %v445_v48 = vsub.f32 %v441_v32, %v433_v40 }
  0xc7   : > { %v427_v42 = vadd.f32 %v426_v35, %v425_v37 }
  0xc9   : > { %v429_v45 = vadd.f32 %v428_v41, %v427_v42 }
  0xcb   : > { %v436_v49 = vsub.f32 %v435_v43, %v429_v45 }
  0xcd   : > { %v446_v50 = vmul.f32 %v442_v44, %v436_v49  ;;  %v447_v51 = vmul.f32 %v443_v46, %v436_v49  ;;  %v448_v52 = vmul.f32 %v444_v47, %v436_v49  ;;  %v449_v53 = vmul.f32 %v445_v48, %v436_v49 }
  0xcf   : > { %v450_v55 = vsub.f32 %v446_v50, %v1215_v0  ;;  %v451_v56 = vsub.f32 %v447_v51, %v1217_v1  ;;  %v452_v57 = vsub.f32 %v448_v52, %v1219_v2  ;;  %v453_v58 = vsub.f32 %v449_v53, %v1221_v3 }
  0xd0   : > { %v470_v2 = vstv %s651_s7 }
  0xd1   : > { %v455_v59 = vmul.f32 %v454_v54, %v450_v55  ;;  %v456_v60 = vmul.f32 %v454_v54, %v451_v56  ;;  %v457_v61 = vmul.f32 %v454_v54, %v452_v57  ;;  %v458_v62 = vmul.f32 %v454_v54, %v453_v58 }
  0xd2   : > { %v471_v10 = vmul.f32 %v470_v2, %v436_v49 }
  0xd3   : > { %v459_v63 = vmul.f32 %v455_v59, %v442_v44  ;;  %v460_v4 = vmul.f32 %v456_v60, %v443_v46  ;;  %v461_v5 = vmul.f32 %v457_v61, %v444_v47  ;;  %v462_v6 = vmul.f32 %v458_v62, %v445_v48 }
  0xd5   : > { %v463_v7 = vsel %vm343_vm0, %v459_v63, 0.0  ;;  %v464_v0 = vsel %vm343_vm0, %v460_v4, 0.0  ;;  %v466_v1 = vsel %vm343_vm0, %v461_v5, 0.0  ;;  %v468_v8 = vsel %vm343_vm0, %v462_v6, 0.0 }
  0xd6   : > { %v465_v3 = vadd.f32 %v464_v0, %v463_v7 }
  0xd8   : > { %v467_v9 = vadd.f32 %v466_v1, %v465_v3 }
  0xda   : > { %v469_v11 = vadd.f32 %v468_v8, %v467_v9 }
  0xdc   : > { %v472_v12 = vsub.f32 %v471_v10, %v469_v11 }
  0xde   : > { %473 = vst [vmem:[%s326_s19] sm:$0x3] %v472_v12 }
  0xdf   : > { %865 = shalt.err (!%p862_p2)
}
  0xe0   : > { %s866_s11 = scalar_lea.hbm %s1268_s9, 32  ;;  %s870_s30 = scalar_lea.hbm %s1321_s4, 64 }
  0xe1   : > { %p867_p4 = scmp.ne.s32.totalorder %s1268_s9, %s866_s11  ;;  %p871_p5 = scmp.lt.u32.totalorder %s1268_s9, %s1321_s4 }
  0xe2   : > { %p872_p10 = scmp.lt.u32.totalorder %s870_s30, %s866_s11  ;;  %p874_p13 = scmp.lt.u32.totalorder %s866_s11, %s1268_s9 }
  0xe3   : > { %p868_p12 = pnand %p867_p4, %p1352_p6 }
  0xe4   : > { %p873_p7 = por %p872_p10, %p871_p5 }
  0xe5   : > { %p869_p9 = pneg %p868_p12 }
  0xe6   : > { %p875_p1 = por %p874_p13, %p873_p7 }
  0xe8   : > { %p876_p11 = pnand %p875_p1, %p869_p9 }
  0xea   : > { %879 = shalt.err (!%p876_p11)
}
  0xeb   : > { %670 = dma.vmem_to_hbm [thread:$0]  (%p1352_p6), %s1270_s24, 32, %s1268_s9, %s475_s22  }
  0xec PF: > { %s501_s23 = sand.u32 1, %s922_s15   ;;  %p1353_p3 = scmp.ne.s32.totalorder %s1342_s6, 0 }
  0xed   : > { %p1354_p8 = scmp.ge.s32.totalorder %s942_s20, 2  ;;  %s502_s5 = scalar_lea.sflag [#allocation4], %s501_s23 }
  0xef   : > { %p687_p0 = pnand %p1354_p8, %p1353_p3 }
  0xf1   : > { %917 = dma.done.wait (!%p687_p0), %s502_s5, 32  }
  0xf2   : > { %919 = vsyncadd (!%p687_p0), %s502_s5, 4294967264  ;;  %s24_s20 = sadd.s32 1, %s942_s20   ;;  %s1355_s27 = sld [smem:[#allocation17_spill]] }
  0xf3   : > { %p21_p2 = scmp.ge.s32.totalorder %s24_s20, 4   ;;  %s1356_s18 = sld [smem:[#allocation15_spill]] }
  0xf4   : > { %s1357_s19 = sld [smem:[#allocation16_spill]]  ;;  %s1358_s15 = smov %s926_s16 }
  0xf5   : > { %s1359_s16 = smov %s930_s17  ;;  %23 = sbr.rel (!%p21_p2) target bundleno = 12 (0xc), region = 110 }
  0xf8   : > { %s1360_s17 = smov %s1355_s27 }
  0xfc   :  { %507 = vsyncpa [#allocation3], 1 }
  0xfd   :  { %509 = vsyncpa [#allocation3 + $0x1], 1 }
  0xfe   :  { %510 = vsyncpa [#allocation8], 1 }
  0xff   :  { %512 = vsyncpa [#allocation8 + $0x1], 1 }
 0x100   :  { %513 = vsyncpa [#allocation4], 1 }
 0x101   :  { %515 = vsyncpa [#allocation4 + $0x1], 1 }
 0x102   :  { %516 = vsyncpa [#allocation5], 1 }
 0x103   :  { %518 = vsyncpa [#allocation5 + $0x1], 1 }

</bundles_post_ra>
